<compile_context>
chip_gen: v7x
topology: tpu7x:2x2x1
jax: 0.10.0
libtpu: 0.0.40
codegen_flags: <defaults>
</compile_context>

<pallas_src>
import functools

import jax
import jax.numpy as jnp
from jax.experimental import pallas as pl
from jax.experimental.pallas import tpu as pltpu

KERNEL_SIZE = 4  # fixed in EquiangularAvgUnpool.__init__


def _unpool_kernel(x_ref, o_ref):
    # x_ref: (1, 1, d2, 1, F)   o_ref: (1, K, d2, K, F)
    # Nearest-neighbour unpool == broadcast along the two size-K axes.
    o_ref[...] = jnp.broadcast_to(x_ref[...], o_ref.shape)


def equiangular_avg_unpool(x, *, ratio=1.0):
    """x: (B, M, F). Returns (B, 16*M, F), nearest-neighbour 4x4 unpooling."""
    B, M, F = x.shape
    d1 = int((M / ratio) ** 0.5)
    d2 = int((M * ratio) ** 0.5)
    assert d1 * d2 == M, "pixels must factor as dim1*dim2 for the given ratio"
    K = KERNEL_SIZE
    R = B * d1  # total latitude rows across the batch

    # Free metadata reshape: (B, M, F) -> (R, 1, d2, 1, F).
    x5 = x.reshape(R, 1, d2, 1, F)

    itemsize = jnp.dtype(x.dtype).itemsize
    bytes_accessed = x.size * itemsize * (1 + K * K)

    out5 = pl.pallas_call(
        _unpool_kernel,
        out_shape=jax.ShapeDtypeStruct((R, K, d2, K, F), x.dtype),
        grid=(R,),
        in_specs=[
            pl.BlockSpec((1, 1, d2, 1, F), lambda n: (n, 0, 0, 0, 0)),
        ],
        out_specs=pl.BlockSpec((1, K, d2, K, F), lambda n: (n, 0, 0, 0, 0)),
        compiler_params=pltpu.CompilerParams(
            dimension_semantics=("parallel",)),
        cost_estimate=pl.CostEstimate(
            flops=0, transcendentals=0, bytes_accessed=bytes_accessed),
    )(x5)

    # Free metadata reshape back to (B, 16*M, F); linear order already matches
    # the PyTorch permute/interpolate/reformat pipeline.
    return out5.reshape(B, K * K * M, F)


def _reference(x, *, ratio=1.0):
    """Pure-JAX reference matching EquiangularAvgUnpool.forward."""
    B, M, F = x.shape
    d1 = int((M / ratio) ** 0.5)
    d2 = int((M * ratio) ** 0.5)
    K = KERNEL_SIZE
    x4 = x.reshape(B, d1, d2, F)
    y = jnp.repeat(jnp.repeat(x4, K, axis=1), K, axis=2)  # nearest upsample
    return y.reshape(B, K * K * M, F)


if __name__ == "__main__":
    # Small deterministic setup: B=2, M=64 pixels (dim1=dim2=8 with ratio=1),
    # F=4 features. Output: (2, 1024, 4).
    B, M, F = 2, 64, 4
    RATIO = 1.0

    key = jax.random.PRNGKey(0)
    x = jax.random.normal(key, (B, M, F), dtype=jnp.float32)

    out = equiangular_avg_unpool(x, ratio=RATIO)
    out = jax.block_until_ready(out)

    ref = _reference(x, ratio=RATIO)
    assert out.shape == (B, KERNEL_SIZE * KERNEL_SIZE * M, F), out.shape
    assert jnp.array_equal(out, ref), "mismatch vs reference"

    print("KERNEL_OK")
</pallas_src>

<mosaic_0001>
module attributes {stable_mosaic.version = 11 : i64} {
  func.func @_unpool_kernel(%arg0: i32, %arg1: memref<1x1x8x1x4xf32, #tpu.memory_space<vmem>>, %arg2: memref<1x4x8x4x4xf32, #tpu.memory_space<vmem>>) attributes {dimension_semantics = [#tpu.dimension_semantics<parallel>], iteration_bounds = array<i64: 16>, scalar_prefetch = 0 : i64, scratch_operands = 0 : i64, tpu.core_type = #tpu.core_type<tc>, window_params = [{transform_indices = @transform_0, window_bounds = array<i64: 1, 1, 8, 1, 4>}, {transform_indices = @transform_1, window_bounds = array<i64: 1, 4, 8, 4, 4>}]} {
    %c0 = arith.constant 0 : index
    %c0_0 = arith.constant 0 : index
    %c0_1 = arith.constant 0 : index
    %c0_2 = arith.constant 0 : index
    %c0_3 = arith.constant 0 : index
    %0 = vector.load %arg1[%c0, %c0_0, %c0_1, %c0_2, %c0_3] : memref<1x1x8x1x4xf32, #tpu.memory_space<vmem>>, vector<1x1x8x1x4xf32>
    %1 = vector.shape_cast %0 : vector<1x1x8x1x4xf32> to vector<1x1x8x1x4xf32>
    %2 = vector.broadcast %1 : vector<1x1x8x1x4xf32> to vector<1x4x8x4x4xf32>
    %c0_4 = arith.constant 0 : index
    %c0_5 = arith.constant 0 : index
    %c0_6 = arith.constant 0 : index
    %c0_7 = arith.constant 0 : index
    %c0_8 = arith.constant 0 : index
    %3 = vector.load %arg2[%c0_4, %c0_5, %c0_6, %c0_7, %c0_8] : memref<1x4x8x4x4xf32, #tpu.memory_space<vmem>>, vector<1x4x8x4x4xf32>
    tpu.vector_store %arg2[%c0_4, %c0_5, %c0_6, %c0_7, %c0_8], %2 {strides = array<i32>} : memref<1x4x8x4x4xf32, #tpu.memory_space<vmem>>, vector<1x4x8x4x4xf32>,
    return
  }
  func.func @transform_0(%arg0: i32) -> (i32, i32, i32, i32, i32) {
    %c0_i32 = arith.constant 0 : i32
    %c0_i32_0 = arith.constant 0 : i32
    %c0_i32_1 = arith.constant 0 : i32
    %c0_i32_2 = arith.constant 0 : i32
    %c0_i32_3 = arith.constant 0 : i32
    return %arg0, %c0_i32, %c0_i32_0, %c0_i32_1, %c0_i32_2 : i32, i32, i32, i32, i32
  }
  func.func @transform_1(%arg0: i32) -> (i32, i32, i32, i32, i32) {
    %c0_i32 = arith.constant 0 : i32
    %c0_i32_0 = arith.constant 0 : i32
    %c0_i32_1 = arith.constant 0 : i32
    %c0_i32_2 = arith.constant 0 : i32
    %c0_i32_3 = arith.constant 0 : i32
    return %arg0, %c0_i32, %c0_i32_0, %c0_i32_1, %c0_i32_2 : i32, i32, i32, i32, i32
  }
}

</mosaic_0001>

<bundles_post_ra>
// kernel: tpu_custom_call.1
= control target key start
LH: loop header
LB: loop body
LE: loop exit
PB: predicated region body
PF: predicated region fallthrough
CT: control target
= control target key end

     0   :  { %s303_s6 = smov 0   ;;  %s396_s0 = inlined_call_operand.vmem [shape: f32[16,1,8,1,4], index: 0, kind: input, shape index: {}]   ;;  %s397_s1 = inlined_call_operand.vmem [shape: f32[16,4,8,4,4], index: 1, kind: output, shape index: {}]  }
   0x1 LB: > { %s258_s7 = sadd.s32 4294967295, %s291_s6   ;;  %p262_p0 = scmp.ge.s32.totalorder %s291_s6, 1  ;;  %s291_s6 = sphi %s303_s6, %s11_s6  }
   0x2   : > { %p86_p1 = scmp.lt.s32.totalorder %s291_s6, 17 }
   0x4   : > { %p87_p2 = pnand %p262_p0, %p86_p1 }
   0x5   : > { %p105_p3 = scmp.lt.s32.totalorder (!%p87_p2), %s258_s7, 15  ;;  %vm170_vm0 = vcmask (!%p87_p2), 27648  }
   0x6   : > { %90 = sbr.rel (%p87_p2) target bundleno = 33 (0x21), region = 24 }
   0xd   : > { %s399_s7 = smov (!%p105_p3, %s258_s7), 15 }
   0xe   : > { %s263_s8 = sshll.u32 %s399_s7, 3  ;;  %s276_s9 = sshll.u32 %s399_s7, 7 }
   0xf   : > { %s314_s12 = scalar_lea.vmem %s396_s0, %s263_s8  ;;  %s319_s15 = scalar_lea.vmem %s397_s1, %s276_s9 }
  0x10   : > { %v266_v0 = vld [vmem:[%s314_s12] ss:$0 sm:$0xff]  ;;  %v267_v1 = vld [vmem:[%s314_s12 + $0x1] ss:$0 sm:$0xff]  ;;  %v268_v2 = vld [vmem:[%s314_s12 + $0x2] ss:$0 sm:$0xff] }
  0x11   : > { %171 = vst.msk [vmem:[%s319_s15] sm:$0xf] %vm170_vm0, %v266_v0  ;;  %179 = vst.msk [vmem:[%s319_s15 + $0x20] sm:$0xf] %vm170_vm0, %v266_v0  ;;  %v269_v3 = vld [vmem:[%s314_s12 + $0x3] ss:$0 sm:$0xff] }
  0x12   : > { %187 = vst.msk [vmem:[%s319_s15 + $0x40] sm:$0xf] %vm170_vm0, %v266_v0  ;;  %195 = vst.msk [vmem:[%s319_s15 + $0x60] sm:$0xf] %vm170_vm0, %v266_v0  ;;  %v270_v4 = vld [vmem:[%s314_s12 + $0x4] ss:$0 sm:$0xff] }
  0x13   : > { %172 = vst.msk [vmem:[%s319_s15 + $0x4] sm:$0xf] %vm170_vm0, %v267_v1  ;;  %180 = vst.msk [vmem:[%s319_s15 + $0x24] sm:$0xf] %vm170_vm0, %v267_v1  ;;  %v271_v5 = vld [vmem:[%s314_s12 + $0x5] ss:$0 sm:$0xff] }
  0x14   : > { %188 = vst.msk [vmem:[%s319_s15 + $0x44] sm:$0xf] %vm170_vm0, %v267_v1  ;;  %196 = vst.msk [vmem:[%s319_s15 + $0x64] sm:$0xf] %vm170_vm0, %v267_v1  ;;  %v272_v6 = vld [vmem:[%s314_s12 + $0x6] ss:$0 sm:$0xff] }
  0x15   : > { %173 = vst.msk [vmem:[%s319_s15 + $0x8] sm:$0xf] %vm170_vm0, %v268_v2  ;;  %181 = vst.msk [vmem:[%s319_s15 + $0x28] sm:$0xf] %vm170_vm0, %v268_v2  ;;  %v273_v7 = vld [vmem:[%s314_s12 + $0x7] ss:$0 sm:$0xff] }
  0x16   : > { %189 = vst.msk [vmem:[%s319_s15 + $0x48] sm:$0xf] %vm170_vm0, %v268_v2  ;;  %197 = vst.msk [vmem:[%s319_s15 + $0x68] sm:$0xf] %vm170_vm0, %v268_v2 }
  0x17   : > { %174 = vst.msk [vmem:[%s319_s15 + $0xc] sm:$0xf] %vm170_vm0, %v269_v3  ;;  %182 = vst.msk [vmem:[%s319_s15 + $0x2c] sm:$0xf] %vm170_vm0, %v269_v3 }
  0x18   : > { %190 = vst.msk [vmem:[%s319_s15 + $0x4c] sm:$0xf] %vm170_vm0, %v269_v3  ;;  %198 = vst.msk [vmem:[%s319_s15 + $0x6c] sm:$0xf] %vm170_vm0, %v269_v3 }
  0x19   : > { %175 = vst.msk [vmem:[%s319_s15 + $0x10] sm:$0xf] %vm170_vm0, %v270_v4  ;;  %183 = vst.msk [vmem:[%s319_s15 + $0x30] sm:$0xf] %vm170_vm0, %v270_v4 }
  0x1a   : > { %191 = vst.msk [vmem:[%s319_s15 + $0x50] sm:$0xf] %vm170_vm0, %v270_v4  ;;  %199 = vst.msk [vmem:[%s319_s15 + $0x70] sm:$0xf] %vm170_vm0, %v270_v4 }
  0x1b   : > { %176 = vst.msk [vmem:[%s319_s15 + $0x14] sm:$0xf] %vm170_vm0, %v271_v5  ;;  %184 = vst.msk [vmem:[%s319_s15 + $0x34] sm:$0xf] %vm170_vm0, %v271_v5 }
  0x1c   : > { %192 = vst.msk [vmem:[%s319_s15 + $0x54] sm:$0xf] %vm170_vm0, %v271_v5  ;;  %200 = vst.msk [vmem:[%s319_s15 + $0x74] sm:$0xf] %vm170_vm0, %v271_v5 }
  0x1d   : > { %177 = vst.msk [vmem:[%s319_s15 + $0x18] sm:$0xf] %vm170_vm0, %v272_v6  ;;  %185 = vst.msk [vmem:[%s319_s15 + $0x38] sm:$0xf] %vm170_vm0, %v272_v6 }
  0x1e   : > { %193 = vst.msk [vmem:[%s319_s15 + $0x58] sm:$0xf] %vm170_vm0, %v272_v6  ;;  %201 = vst.msk [vmem:[%s319_s15 + $0x78] sm:$0xf] %vm170_vm0, %v272_v6 }
  0x1f   : > { %178 = vst.msk [vmem:[%s319_s15 + $0x1c] sm:$0xf] %vm170_vm0, %v273_v7  ;;  %186 = vst.msk [vmem:[%s319_s15 + $0x3c] sm:$0xf] %vm170_vm0, %v273_v7 }
  0x20   : > { %194 = vst.msk [vmem:[%s319_s15 + $0x5c] sm:$0xf] %vm170_vm0, %v273_v7  ;;  %202 = vst.msk [vmem:[%s319_s15 + $0x7c] sm:$0xf] %vm170_vm0, %v273_v7 }
  0x21 PF: > { %s11_s6 = sadd.s32 1, %s291_s6  }
  0x22   : > { %p8_p4 = scmp.ge.s32.totalorder %s11_s6, 18  }
  0x24   :  { %10 = sbr.rel (!%p8_p4) target bundleno = 1 (0x1), region = 54 }

</bundles_post_ra>
